<compile_context>
chip_gen: v6e
topology: v6e:2x2x1
jax: 0.10.0
libtpu: 0.0.40
codegen_flags: <defaults>
</compile_context>

<pallas_src>
import functools

import jax
import jax.numpy as jnp
from jax.experimental import pallas as pl
from jax.experimental.pallas import tpu as pltpu

EPS = 1e-6
LANES = 128
TILE_ROWS = 2048  # 2048 x 128 f32 = 1 MiB per input block (fits all VMEM defaults)


def _charbonnier_kernel(x_ref, y_ref, o_ref, *, tile_rows, rows, need_mask, eps):
    # x_ref / y_ref: (tile_rows, LANES) in native dtype; o_ref: (1, 1, LANES) f32.
    d = x_ref[...].astype(jnp.float32) - y_ref[...].astype(jnp.float32)
    vals = jnp.sqrt(d * d + jnp.float32(eps * eps))

    if need_mask:
        # Last block may read past the end of the array: zero those rows.
        i = pl.program_id(0)
        row_idx = jax.lax.broadcasted_iota(jnp.int32, (tile_rows, LANES), 0)
        valid = (i * tile_rows + row_idx) < rows
        vals = jnp.where(valid, vals, jnp.float32(0.0))

    # Sublane fold to a single lane-dense row; cross-lane reduce happens once,
    # outside the kernel, on the tiny partials array.
    o_ref[...] = vals.sum(axis=0, keepdims=True)[None]


def charbonnier_loss(x, y, eps=EPS):
    assert x.shape == y.shape
    n_true = x.size
    eps2 = jnp.float32(eps * eps)

    xf = x.reshape(-1)
    yf = y.reshape(-1)

    # Handle a (< 128 element) tail that doesn't fill a lane row in plain JAX.
    rem = n_true % LANES
    n_main = n_true - rem
    tail_sum = jnp.float32(0.0)
    if rem:
        dt = xf[n_main:].astype(jnp.float32) - yf[n_main:].astype(jnp.float32)
        tail_sum = jnp.sum(jnp.sqrt(dt * dt + eps2))
        # NOTE: this slice copies the bulk; it only triggers when the element
        # count is not a multiple of 128 (never for typical NCHW image shapes).
        xf = xf[:n_main]
        yf = yf[:n_main]

    if n_main == 0:
        return tail_sum / jnp.float32(n_true)

    rows = n_main // LANES
    x2 = xf.reshape(rows, LANES)
    y2 = yf.reshape(rows, LANES)

    # Single full-array block for small inputs; otherwise big fixed tiles with
    # an in-kernel mask for the ragged last block.
    tile_rows = rows if rows <= TILE_ROWS else TILE_ROWS
    grid_n = pl.cdiv(rows, tile_rows)
    need_mask = (rows % tile_rows) != 0

    kernel = functools.partial(
        _charbonnier_kernel,
        tile_rows=tile_rows,
        rows=rows,
        need_mask=need_mask,
        eps=eps,
    )

    partials = pl.pallas_call(
        kernel,
        out_shape=jax.ShapeDtypeStruct((grid_n, 1, LANES), jnp.float32),
        grid_spec=pltpu.PrefetchScalarGridSpec(
            num_scalar_prefetch=0,
            grid=(grid_n,),
            in_specs=[
                pl.BlockSpec((tile_rows, LANES), lambda i: (i, 0)),
                pl.BlockSpec((tile_rows, LANES), lambda i: (i, 0)),
            ],
            out_specs=pl.BlockSpec((1, 1, LANES), lambda i: (i, 0, 0)),
        ),
        compiler_params=pltpu.CompilerParams(
            dimension_semantics=("parallel",),  # independent partials -> megacore on v7x
        ),
    )(x2, y2)

    total = jnp.sum(partials) + tail_sum
    return total / jnp.float32(n_true)


def charbonnier_loss_ref(x, y, eps=EPS):
    d = x.astype(jnp.float32) - y.astype(jnp.float32)
    return jnp.mean(jnp.sqrt(d * d + jnp.float32(eps * eps)))


if __name__ == "__main__":
    key = jax.random.PRNGKey(0)
    kx, ky = jax.random.split(key)
    # NCHW, same as the PyTorch module would receive.
    x = jax.random.normal(kx, (2, 4, 16, 16), dtype=jnp.float32)
    y = jax.random.normal(ky, (2, 4, 16, 16), dtype=jnp.float32)

    out = charbonnier_loss(x, y)
    jax.block_until_ready(out)

    ref = charbonnier_loss_ref(x, y)
    assert jnp.allclose(out, ref, rtol=1e-5, atol=1e-6), (out, ref)
    print("KERNEL_OK")
</pallas_src>

<mosaic_0001>
module attributes {stable_mosaic.version = 11 : i64} {
  func.func @_charbonnier_kernel(%arg0: i32, %arg1: memref<16x128xf32, #tpu.memory_space<vmem>>, %arg2: memref<16x128xf32, #tpu.memory_space<vmem>>, %arg3: memref<1x1x128xf32, #tpu.memory_space<vmem>>) attributes {dimension_semantics = [#tpu.dimension_semantics<parallel>], iteration_bounds = array<i64: 1>, scalar_prefetch = 0 : i64, scratch_operands = 0 : i64, tpu.core_type = #tpu.core_type<tc>, window_params = [{transform_indices = @transform_0, window_bounds = array<i64: 16, 128>}, {transform_indices = @transform_1, window_bounds = array<i64: 16, 128>}, {transform_indices = @transform_2, window_bounds = array<i64: 1, 1, 128>}]} {
    %c0 = arith.constant 0 : index
    %c0_0 = arith.constant 0 : index
    %0 = vector.load %arg1[%c0, %c0_0] : memref<16x128xf32, #tpu.memory_space<vmem>>, vector<16x128xf32>
    %c0_1 = arith.constant 0 : index
    %c0_2 = arith.constant 0 : index
    %1 = vector.load %arg2[%c0_1, %c0_2] : memref<16x128xf32, #tpu.memory_space<vmem>>, vector<16x128xf32>
    %2 = arith.subf %0, %1 : vector<16x128xf32>
    %3 = arith.mulf %2, %2 : vector<16x128xf32>
    %cst = arith.constant 9.99999996E-13 : f32
    %4 = vector.broadcast %cst : f32 to vector<16x128xf32>
    %5 = arith.addf %3, %4 : vector<16x128xf32>
    %6 = math.sqrt %5 : vector<16x128xf32>
    %cst_3 = arith.constant dense<0.000000e+00> : vector<128xf32>
    %7 = vector.multi_reduction <add>, %6, %cst_3 [0] : vector<16x128xf32> to vector<128xf32>
    %8 = vector.shape_cast %7 : vector<128xf32> to vector<1x128xf32>
    %9 = vector.shape_cast %8 : vector<1x128xf32> to vector<1x1x128xf32>
    %c0_4 = arith.constant 0 : index
    %c0_5 = arith.constant 0 : index
    %c0_6 = arith.constant 0 : index
    %10 = vector.load %arg3[%c0_4, %c0_5, %c0_6] : memref<1x1x128xf32, #tpu.memory_space<vmem>>, vector<1x1x128xf32>
    tpu.vector_store %arg3[%c0_4, %c0_5, %c0_6], %9 {strides = array<i32>} : memref<1x1x128xf32, #tpu.memory_space<vmem>>, vector<1x1x128xf32>,
    return
  }
  func.func @transform_0(%arg0: i32) -> (i32, i32) {
    %c0_i32 = arith.constant 0 : i32
    %c0_i32_0 = arith.constant 0 : i32
    return %arg0, %c0_i32 : i32, i32
  }
  func.func @transform_1(%arg0: i32) -> (i32, i32) {
    %c0_i32 = arith.constant 0 : i32
    %c0_i32_0 = arith.constant 0 : i32
    return %arg0, %c0_i32 : i32, i32
  }
  func.func @transform_2(%arg0: i32) -> (i32, i32, i32) {
    %c0_i32 = arith.constant 0 : i32
    %c0_i32_0 = arith.constant 0 : i32
    %c0_i32_1 = arith.constant 0 : i32
    return %arg0, %c0_i32, %c0_i32_0 : i32, i32, i32
  }
}

</mosaic_0001>

<bundles_post_ra>
// kernel: tpu_custom_call.1
= control target key start
LH: loop header
LB: loop body
LE: loop exit
PB: predicated region body
PF: predicated region fallthrough
CT: control target
= control target key end

     0   :  { %7 = vsyncpa [#allocation3], 0  ;;  %s192_s0 = inlined_call_operand.hbm [shape: f32[16,128], index: 0, kind: input, shape index: {}]   ;;  %s193_s1 = inlined_call_operand.hbm [shape: f32[16,128], index: 1, kind: input, shape index: {}]   ;;  %s194_s2 = inlined_call_operand.hbm [shape: f32[1,1,128], index: 2, kind: output, shape index: {}]  }
   0x1   :  { %8 = vsyncpa [#allocation6], 0 }
   0x2   :  { %9 = vsyncpa [#allocation4], 0  ;;  %s163_s9 = smov [#allocation2]  }
   0x3   :  { %s15_s10 = sshll.u32 %s163_s9, 4  ;;  %s16_s10 = int_to_ptr.vmem [resolvable:$true] %s15_s10 }
   0x4   :  { %s105_s11 = scalar_lea.vmem %s16_s10, 256  ;;  %p110_p1 = scmp.lt.s32.totalorder %s16_s10, %s16_s10 }
   0x5   :  { %p106_p0 = scmp.ne.s32.totalorder %s16_s10, %s105_s11  ;;  %p111_p2 = scmp.lt.s32.totalorder %s105_s11, %s105_s11 }
   0x7   :  { %p112_p3 = por %p111_p2, %p110_p1 }
   0x9   :  { %p113_p4 = pnand %p112_p3, %p106_p0 }
   0xb   :  { %116 = shalt.err (!%p113_p4)
}
   0xc   :  { %s164_s12 = smov 128   ;;  %s165_s13 = smov 8  }
   0xd   :  { %21 = dma.hbm_to_vmem [thread:$0]  %s192_s0, 256, %s16_s10, [#allocation3], %s164_s12, %s164_s12, %s165_s13  }
   0xe   :  { %s166_s16 = smov [#allocation5]  }
   0xf   :  { %s27_s17 = sshll.u32 %s166_s16, 4  ;;  %s28_s17 = int_to_ptr.vmem [resolvable:$true] %s27_s17 }
  0x10   :  { %s125_s18 = scalar_lea.vmem %s28_s17, 256  ;;  %p130_p6 = scmp.lt.s32.totalorder %s28_s17, %s28_s17 }
  0x11   :  { %p126_p5 = scmp.ne.s32.totalorder %s28_s17, %s125_s18  ;;  %p131_p7 = scmp.lt.s32.totalorder %s125_s18, %s125_s18 }
  0x13   :  { %p132_p8 = por %p131_p7, %p130_p6 }
  0x15   :  { %p133_p9 = pnand %p132_p8, %p126_p5 }
  0x17   :  { %136 = shalt.err (!%p133_p9)
}
  0x18   :  { %33 = dma.hbm_to_vmem [thread:$0]  %s193_s1, 256, %s28_s17, [#allocation6], %s164_s12, %s164_s12, %s165_s13  }
  0x19   :  { %157 = dma.done.wait [#allocation3], 256  }
  0x1a   :  { %158 = vsyncadd [#allocation3], 4294967040 }
  0x1b   :  { %159 = dma.done.wait [#allocation6], 256  }
  0x1c   :  { %160 = vsyncadd [#allocation6], 4294967040  ;;  %v40_v0 = vld [vmem:[#allocation2] sm:$0xff]  ;;  %v41_v1 = vld [vmem:[#allocation2 + $0x8] sm:$0xff]  ;;  %s167_s0 = smov [#allocation7]  }
  0x1d   :  { %v42_v2 = vld [vmem:[#allocation5] sm:$0xff]  ;;  %v43_v3 = vld [vmem:[#allocation5 + $0x8] sm:$0xff]  ;;  %s78_s1 = sshll.u32 %s167_s0, 4  ;;  %s79_s1 = int_to_ptr.vmem [resolvable:$true] %s78_s1 }
  0x1e   :  { %v44_v4 = vsub.f32 %v40_v0, %v42_v2  ;;  %v45_v5 = vsub.f32 %v41_v1, %v43_v3  ;;  %s137_s21 = scalar_lea.vmem %s79_s1, 16  ;;  %s141_s22 = scalar_lea.vmem %s79_s1, 32 }
  0x1f   :  { %p138_p10 = scmp.ne.s32.totalorder %s79_s1, %s137_s21  ;;  %p142_p11 = scmp.lt.s32.totalorder %s79_s1, %s79_s1 }
  0x20   :  { %v46_v6 = vmul.f32 %v44_v4, %v44_v4  ;;  %v47_v7 = vmul.f32 %v45_v5, %v45_v5  ;;  %p143_p12 = scmp.lt.s32.totalorder %s141_s22, %s137_s21 }
  0x22   :  { %v48_v8 = vadd.f32 1e-12, %v46_v6  ;;  %v49_v9 = vadd.f32 1e-12, %v47_v7  ;;  %p144_p13 = por %p143_p12, %p142_p11 }
  0x24   :  { %93 = vrsqrt.f32 %v48_v8  ;;  %vm52_vm0 = vcmp.eq.f32.partialorder %v48_v8, inf  ;;  %v55_v11 = vand.u32 2147483648, %v48_v8  ;;  %vm54_vm1 = vcmp.eq.f32.partialorder %v48_v8, 0.0  ;;  %p145_p0 = pnand %p144_p13, %p138_p10 }
  0x25   :  { %95 = vrsqrt.f32 %v49_v9  ;;  %vm59_vm2 = vcmp.eq.f32.partialorder %v49_v9, inf  ;;  %v62_v14 = vand.u32 2147483648, %v49_v9  ;;  %vm61_vm3 = vcmp.eq.f32.partialorder %v49_v9, 0.0 }
  0x31   :  { %v94_v10 = vpop.eup %93 }
  0x32   :  { %v96_v12 = vpop.eup %95  ;;  %v51_v13 = vmul.f32 %v94_v10, %v48_v8 }
  0x33   :  { %v58_v15 = vmul.f32 %v96_v12, %v49_v9 }
  0x34   :  { %v53_v16 = vsel %vm52_vm0, %v48_v8, %v51_v13 }
  0x35   :  { %v56_v17 = vsel %vm54_vm1, %v55_v11, %v53_v16  ;;  %v60_v18 = vsel %vm59_vm2, %v49_v9, %v58_v15 }
  0x36   :  { %v63_v19 = vsel %vm61_vm3, %v62_v14, %v60_v18 }
  0x37   :  { %v64_v20 = vadd.f32 %v63_v19, %v56_v17 }
  0x39   :  { %v65_v21 = vrot.slane %v64_v20, 4 }
  0x3b   :  { %v66_v22 = vadd.f32 %v65_v21, %v64_v20 }
  0x3d   :  { %v67_v23 = vrot.slane %v66_v22, 2 }
  0x3f   :  { %v68_v24 = vadd.f32 %v67_v23, %v66_v22 }
  0x41   :  { %v69_v25 = vrot.slane %v68_v24, 1 }
  0x43   :  { %v70_v26 = vadd.f32 %v69_v25, %v68_v24 }
  0x45   :  { %71 = vst [vmem:[#allocation7] sm:$0x1] %v70_v26 }
  0x46   :  { %148 = shalt.err (!%p145_p0)
}
  0x47   :  { %81 = dma.vmem_to_hbm [thread:$0]  %s79_s1, 16, %s194_s2, [#allocation4]  }
  0x48   :  { %161 = dma.done.wait [#allocation4], 16  }
  0x49   :  { %162 = vsyncadd [#allocation4], 4294967280 }
  0x4a   :  { %85 = vsyncpa [#allocation3], 1 }
  0x4b   :  { %86 = vsyncpa [#allocation6], 1 }
  0x4c   :  { %87 = vsyncpa [#allocation4], 1 }

</bundles_post_ra>
